<compile_context>
chip_gen: v7x
topology: tpu7x:2x2x1
jax: 0.10.0
libtpu: 0.0.40
codegen_flags: <defaults>
</compile_context>

<pallas_src>
import functools

import jax
import jax.numpy as jnp
from jax.experimental import pallas as pl
from jax.experimental.pallas import tpu as pltpu


# ----------------------------- helpers ---------------------------------------


def _cdiv(a, b):
    return -(-a // b)


def _tpu_vmem_capacity():
    try:
        return int(pltpu.get_tpu_info().vmem_capacity_bytes)
    except Exception:
        return 64 * 1024 * 1024  # conservative (v7x per-TC capacity)


def _pick_batch_block(batch, per_row_bytes, budget_bytes):
    """Largest batch block that (a) divides batch, (b) is a multiple of 8 or
    equals batch (keeps the (8,128) sublane rule), (c) fits the VMEM budget,
    preferring a grid of >= 2 steps so v7x's second TensorCore has work."""
    cands = [d for d in range(1, batch + 1)
             if batch % d == 0 and (d % 8 == 0 or d == batch)]
    fitting = [d for d in cands if d * per_row_bytes <= budget_bytes]
    if not fitting:
        fitting = [min(cands)]
    ge2 = [d for d in fitting if batch // d >= 2]
    pool = ge2 if ge2 else fitting
    return max(pool)


def _build_avg_matrix(seq_len, kernel_size, stride, pad, out_len):
    """M such that (M @ x)[t] == mean_k x[clip(t*stride + k - pad, 0, L-1)]."""
    t = jnp.arange(out_len, dtype=jnp.int32)[:, None]     # (out_len, 1)
    j = jnp.arange(seq_len, dtype=jnp.int32)[None, :]     # (1, L)
    lo = t * stride - pad
    hi = lo + (kernel_size - 1)
    interior = ((j >= jnp.maximum(lo, 0)) &
                (j <= jnp.minimum(hi, seq_len - 1))).astype(jnp.float32)
    front = jnp.where(j == 0, jnp.maximum(-lo, 0), 0).astype(jnp.float32)
    end = jnp.where(j == seq_len - 1,
                    jnp.maximum(hi - (seq_len - 1), 0), 0).astype(jnp.float32)
    return (interior + front + end) * (1.0 / kernel_size)


# ----------------------------- kernels ----------------------------------------


def _mavg_flat_kernel(x_ref, o_ref, *, kernel_size, pad, seq_len, n_ch,
                      out_flat):
    """stride == 1, K <= 32: lane-dense flattened (time*channel) layout.

    x_ref : (bt, L*C)        input block
    o_ref : (bt, out_len*C)  output block
    """
    C = n_ch
    K = kernel_size
    x = x_ref[...].astype(jnp.float32)                        # (bt, L*C)

    # Replicate padding, built once in VMEM (no padded copy in HBM).
    # TODO(synk): replace with pltpu.roll + iota-mask boundary corrections.
    if pad > 0:
        front = jnp.tile(x[:, 0:C], (1, pad))                 # (bt, pad*C)
        back = jnp.tile(x[:, (seq_len - 1) * C:seq_len * C], (1, pad))
        xp = jnp.concatenate([front, x, back], axis=1)        # (bt, Lp*C)
    else:
        xp = x
    Lp = seq_len + 2 * pad

    # Log-tree window sum: power-of-two window sums by doubling, then combine
    # the set bits of K.  ceil(log2 K) + popcount(K) - 1 adds instead of K - 1.
    pow_sums = {1: xp}
    m = 1
    while 2 * m <= K:
        prev = pow_sums[m]
        n_valid = Lp - 2 * m + 1
        pow_sums[2 * m] = (prev[:, :n_valid * C]
                           + prev[:, m * C:(m + n_valid) * C])
        m *= 2

    acc = None
    off = 0
    while m >= 1:
        if K & m:
            term = pow_sums[m][:, off * C:off * C + out_flat]
            acc = term if acc is None else acc + term
            off += m
        m //= 2

    o_ref[...] = (acc * (1.0 / K)).astype(o_ref.dtype)


def _mavg_matmul_kernel(m_ref, x_ref, o_ref):
    """General path (stride > 1 or K > 32): one lane-dense MXU matmul.

    m_ref : (out_len, L) f32, encodes padding + stride + 1/K
    x_ref : (L, tn)      lane-dense block of x rearranged to (L, B*C)
    o_ref : (out_len, tn)
    """
    o_ref[...] = jnp.dot(m_ref[...], x_ref[...].astype(jnp.float32),
                         preferred_element_type=jnp.float32).astype(o_ref.dtype)


# ------------------------------ wrapper ---------------------------------------


def moving_avg(x, kernel_size, stride=1):
    """x: (B, L, C) float array. Returns (B, L_out, C), matching the module."""
    B, L, C = x.shape
    K = int(kernel_size)
    s = int(stride)
    pad = (K - 1) // 2
    Lp = L + 2 * pad
    out_len = (Lp - K) // s + 1
    assert out_len >= 1, "sequence too short for this kernel_size/stride"
    itemsize = jnp.dtype(x.dtype).itemsize

    cap = _tpu_vmem_capacity()
    budget = min(cap // 10, 12 * 1024 * 1024)          # per-step working set
    vmem_limit = min(cap // 2, 64 * 1024 * 1024)
    cparams = pltpu.CompilerParams(dimension_semantics=("parallel",),
                                   vmem_limit_bytes=int(vmem_limit))

    if s == 1 and K <= 32:
        # Lane-dense flattened path: (B, L, C) -> (B, L*C) is a free reshape.
        out_flat = out_len * C
        x_flat = x.reshape(B, L * C)
        nlevels, mlev = 1, 1
        while 2 * mlev <= K:
            mlev *= 2
            nlevels += 1
        per_row = (2 * itemsize * (L * C + out_flat)            # dbl-buf I/O
                   + 4 * (L * C + (1 + nlevels) * Lp * C + out_flat))  # f32 tmp
        bt = _pick_batch_block(B, per_row, budget)
        kernel = functools.partial(_mavg_flat_kernel, kernel_size=K, pad=pad,
                                   seq_len=L, n_ch=C, out_flat=out_flat)
        out = pl.pallas_call(
            kernel,
            out_shape=jax.ShapeDtypeStruct((B, out_flat), x.dtype),
            grid_spec=pltpu.PrefetchScalarGridSpec(
                num_scalar_prefetch=0,
                grid=(B // bt,),
                in_specs=[pl.BlockSpec((bt, L * C), lambda i: (i, 0))],
                out_specs=pl.BlockSpec((bt, out_flat), lambda i: (i, 0))),
            compiler_params=cparams,
        )(x_flat)
        return out.reshape(B, out_len, C)

    # General path: lane-dense banded-matrix matmul on the MXU.
    #   out_flat(L_out, B*C) = M(L_out, L) @ x_flat(L, B*C)
    # M bakes in replicate padding, stride and the 1/K scale.
    N = B * C
    m = _build_avg_matrix(L, K, s, pad, out_len)                # (out_len, L)
    x_flat = jnp.transpose(x, (1, 0, 2)).reshape(L, N)          # (L, B*C)
    fixed = 2 * out_len * L * 4                                 # resident M
    per_col = (2 * itemsize + 4) * (L + out_len)                # per lane col
    if N <= 128:
        tn = N
    else:
        avail = max(budget - fixed, 128 * per_col)
        tn_budget = max(1, avail // (128 * per_col)) * 128
        n128 = _cdiv(N, 128)
        tn_cap = 128 * ((n128 + 1) // 2)        # grid >= 2 -> both v7x TCs busy
        tn = max(128, min(tn_budget, tn_cap))
    grid_n = _cdiv(N, tn)
    out = pl.pallas_call(
        _mavg_matmul_kernel,
        out_shape=jax.ShapeDtypeStruct((out_len, N), x.dtype),
        grid_spec=pltpu.PrefetchScalarGridSpec(
            num_scalar_prefetch=0,
            grid=(grid_n,),
            in_specs=[pl.BlockSpec((out_len, L), lambda j: (0, 0)),  # M once
                      pl.BlockSpec((L, tn), lambda j: (0, j))],
            out_specs=pl.BlockSpec((out_len, tn), lambda j: (0, j))),
        compiler_params=cparams,
    )(m, x_flat)
    return jnp.transpose(out.reshape(out_len, B, C), (1, 0, 2))


# --------------------------- self-check ---------------------------------------


def _moving_avg_ref(x, kernel_size, stride):
    """Pure-JAX replica of the PyTorch module's forward."""
    pad = (kernel_size - 1) // 2
    xp = jnp.concatenate(
        [jnp.repeat(x[:, 0:1, :], pad, axis=1), x,
         jnp.repeat(x[:, -1:, :], pad, axis=1)], axis=1)
    out_len = (xp.shape[1] - kernel_size) // stride + 1
    return jnp.stack(
        [xp[:, t * stride:t * stride + kernel_size, :].mean(axis=1)
         for t in range(out_len)], axis=1)


if __name__ == "__main__":
    key = jax.random.PRNGKey(0)

    # (kernel_size, stride, (B, L, C)) — exercises both kernel paths,
    # multiple-of-8 batch blocking and lane tiling of the matmul path.
    configs = [
        (5, 1, (2, 16, 8)),      # small K, stride 1 -> flat path, bt == B
        (25, 1, (16, 96, 8)),    # K=25 stride 1 -> flat path, bt=8, grid=2
        (24, 1, (4, 32, 8)),     # even K, stride 1 -> flat path
        (4, 2, (2, 16, 8)),      # stride > 1 -> MXU path, tiny lane count
        (25, 4, (8, 96, 32)),    # stride > 1, B*C=256 -> lane-tiled MXU path
        (9, 2, (4, 64, 40)),     # stride > 1, B*C=160 -> ragged last lane block
        (35, 1, (2, 64, 8)),     # very large K, stride 1 -> MXU path
    ]
    for idx, (K, s, shape) in enumerate(configs):
        key, sub = jax.random.split(key)
        x = jax.random.normal(sub, shape, dtype=jnp.float32)
        out = jax.block_until_ready(moving_avg(x, K, s))
        ref = _moving_avg_ref(x, K, s)
        assert out.shape == ref.shape, (idx, out.shape, ref.shape)
        err = float(jnp.max(jnp.abs(out - ref)))
        assert err < 1e-5, f"config {idx}: max abs err {err}"

    print("KERNEL_OK")
</pallas_src>

<mosaic_0001>
module attributes {stable_mosaic.version = 11 : i64} {
  func.func @_mavg_flat_kernel(%arg0: i32, %arg1: memref<2x128xf32, #tpu.memory_space<vmem>>, %arg2: memref<2x128xf32, #tpu.memory_space<vmem>>) attributes {dimension_semantics = [#tpu.dimension_semantics<parallel>], iteration_bounds = array<i64: 1>, scalar_prefetch = 0 : i64, scratch_operands = 0 : i64, tpu.core_type = #tpu.core_type<tc>, window_params = [{transform_indices = @transform_0, window_bounds = array<i64: 2, 128>}, {transform_indices = @transform_1, window_bounds = array<i64: 2, 128>}]} {
    %c0 = arith.constant 0 : index
    %c0_0 = arith.constant 0 : index
    %0 = vector.load %arg1[%c0, %c0_0] : memref<2x128xf32, #tpu.memory_space<vmem>>, vector<2x128xf32>
    %1 = vector.extract_strided_slice %0 {offsets = [0, 0], sizes = [2, 8], strides = [1, 1]} : vector<2x128xf32> to vector<2x8xf32>
    %2 = tpu.concatenate %1, %1 in 1 : vector<2x8xf32>, vector<2x8xf32> -> vector<2x16xf32>
    %3 = vector.extract_strided_slice %0 {offsets = [0, 120], sizes = [2, 8], strides = [1, 1]} : vector<2x128xf32> to vector<2x8xf32>
    %4 = tpu.concatenate %3, %3 in 1 : vector<2x8xf32>, vector<2x8xf32> -> vector<2x16xf32>
    %5 = tpu.concatenate %2, %0, %4 in 1 : vector<2x16xf32>, vector<2x128xf32>, vector<2x16xf32> -> vector<2x160xf32>
    %6 = vector.extract_strided_slice %5 {offsets = [0, 0], sizes = [2, 152], strides = [1, 1]} : vector<2x160xf32> to vector<2x152xf32>
    %7 = vector.extract_strided_slice %5 {offsets = [0, 8], sizes = [2, 152], strides = [1, 1]} : vector<2x160xf32> to vector<2x152xf32>
    %8 = arith.addf %6, %7 : vector<2x152xf32>
    %9 = vector.extract_strided_slice %8 {offsets = [0, 0], sizes = [2, 136], strides = [1, 1]} : vector<2x152xf32> to vector<2x136xf32>
    %10 = vector.extract_strided_slice %8 {offsets = [0, 16], sizes = [2, 136], strides = [1, 1]} : vector<2x152xf32> to vector<2x136xf32>
    %11 = arith.addf %9, %10 : vector<2x136xf32>
    %12 = vector.extract_strided_slice %11 {offsets = [0, 0], sizes = [2, 128], strides = [1, 1]} : vector<2x136xf32> to vector<2x128xf32>
    %13 = vector.extract_strided_slice %5 {offsets = [0, 32], sizes = [2, 128], strides = [1, 1]} : vector<2x160xf32> to vector<2x128xf32>
    %14 = arith.addf %12, %13 : vector<2x128xf32>
    %cst = arith.constant 2.000000e-01 : f32
    %15 = vector.broadcast %cst : f32 to vector<2x128xf32>
    %16 = arith.mulf %14, %15 : vector<2x128xf32>
    %c0_1 = arith.constant 0 : index
    %c0_2 = arith.constant 0 : index
    %17 = vector.load %arg2[%c0_1, %c0_2] : memref<2x128xf32, #tpu.memory_space<vmem>>, vector<2x128xf32>
    tpu.vector_store %arg2[%c0_1, %c0_2], %16 {strides = array<i32>} : memref<2x128xf32, #tpu.memory_space<vmem>>, vector<2x128xf32>,
    return
  }
  func.func @transform_0(%arg0: i32) -> (i32, i32) {
    %c0_i32 = arith.constant 0 : i32
    %c0_i32_0 = arith.constant 0 : i32
    return %arg0, %c0_i32 : i32, i32
  }
  func.func @transform_1(%arg0: i32) -> (i32, i32) {
    %c0_i32 = arith.constant 0 : i32
    %c0_i32_0 = arith.constant 0 : i32
    return %arg0, %c0_i32 : i32, i32
  }
}

</mosaic_0001>

<bundles_post_ra>
// kernel: tpu_custom_call.1
= control target key start
LH: loop header
LB: loop body
LE: loop exit
PB: predicated region body
PF: predicated region fallthrough
CT: control target
= control target key end

     0   :  { %6 = vsyncpa [#allocation3], 0  ;;  %s182_s0 = inlined_call_operand.hbm [shape: f32[2,128], index: 0, kind: input, shape index: {}]   ;;  %s183_s1 = inlined_call_operand.hbm [shape: f32[2,128], index: 1, kind: output, shape index: {}]  }
   0x1   :  { %7 = vsyncpa [#allocation4], 0  ;;  %s141_s6 = smov [#allocation2]   ;;  %s93_s10 = scalar_lea.hbm %s182_s0, 32 }
   0x2   :  { %s14_s7 = sshll.u32 %s141_s6, 4  ;;  %p94_p0 = scmp.ne.s32.totalorder %s182_s0, %s93_s10  ;;  %s15_s7 = int_to_ptr.vmem [resolvable:$true] %s14_s7 }
   0x3   :  { %p97_p1 = scmp.lt.u32.totalorder %s93_s10, %s182_s0 }
   0x5   :  { %p99_p2 = pnand %p97_p1, %p94_p0 }
   0x7   :  { %102 = shalt.err (!%p99_p2)
}
   0x8   :  { %s103_s15 = scalar_lea.vmem %s15_s7, 32  ;;  %p108_p4 = scmp.lt.s32.totalorder %s15_s7, %s15_s7 }
   0x9   :  { %p104_p3 = scmp.ne.s32.totalorder %s15_s7, %s103_s15  ;;  %p109_p5 = scmp.lt.s32.totalorder %s103_s15, %s103_s15 }
   0xb   :  { %p110_p6 = por %p109_p5, %p108_p4 }
   0xd   :  { %p111_p7 = pnand %p110_p6, %p104_p3 }
   0xf   :  { %114 = shalt.err (!%p111_p7)
}
  0x10   :  { %17 = dma.hbm_to_vmem [thread:$0]  %s182_s0, 32, %s15_s7, [#allocation3]  }
  0x11   :  { %137 = dma.done.wait [#allocation3], 32  }
  0x12   :  { %138 = vsyncadd [#allocation3], 4294967264  ;;  %v21_v0 = vld [vmem:[#allocation2] sm:$0x3]  ;;  %s142_s18 = smov 8   ;;  %s143_s19 = smov 16  }
  0x13   :  { %23 = vrot.lane.b32.xlu0 %v21_v0, %s142_s18  ;;  %vm26_vm0 = vcmask 64512   ;;  %vm36_vm1 = vcmask 130048   ;;  %s144_s20 = smov 120   ;;  %vm45_vm2 = vcmask 982016   ;;  %s145_s0 = smov 112   ;;  %vm57_vm3 = vcmask 916480  }
  0x14   :  { %s146_s21 = smov 96   ;;  %vm65_vm4 = vcmask 785408   ;;  %s147_s22 = smov [#allocation5]  }
  0x15   :  { %s77_s23 = sshll.u32 %s147_s22, 4  ;;  %s78_s23 = int_to_ptr.vmem [resolvable:$true] %s77_s23 }
  0x16   :  { %s115_s24 = scalar_lea.vmem %s78_s23, 32  ;;  %p120_p9 = scmp.lt.s32.totalorder %s78_s23, %s78_s23 }
  0x17   :  { %28 = vrot.lane.b32.xlu0 %v21_v0, %s143_s19  ;;  %p116_p8 = scmp.ne.s32.totalorder %s78_s23, %s115_s24  ;;  %p121_p10 = scmp.lt.s32.totalorder %s115_s24, %s115_s24 }
  0x19   :  { %p122_p11 = por %p121_p10, %p120_p9 }
  0x1b   :  { %p123_p12 = pnand %p122_p11, %p116_p8 }
  0x85   :  { %v24_v1 = vpop.permute.xlu0 %23 }
  0x86   :  { %v27_v4 = vsel %vm26_vm0, %v21_v0, %v24_v1 }
  0x89   :  { %v29_v2 = vpop.permute.xlu0 %28 }
  0x8a   :  { %v31_v3 = vsel %vm26_vm0, %v24_v1, %v29_v2  ;;  %v37_v5 = vsel %vm36_vm1, %v27_v4, %v29_v2 }
  0x8b   :  { %33 = vrot.lane.b32.xlu1 %v31_v3, %s143_s19 }
  0x8f   :  { %41 = vrot.lane.b32.xlu1 %v37_v5, %s144_s20 }
  0xfd   :  { %v34_v6 = vpop.permute.xlu1 %33 }
  0xfe   :  { %v38_v7 = vsel %vm36_vm1, %v29_v2, %v34_v6 }
  0xff   :  { %43 = vrot.lane.b32.xlu0 %v38_v7, %s144_s20 }
 0x101   :  { %v42_v8 = vpop.permute.xlu1 %41 }
 0x171   :  { %v44_v9 = vpop.permute.xlu0 %43 }
 0x172   :  { %v46_v10 = vsel %vm45_vm2, %v42_v8, %v44_v9  ;;  %v50_v11 = vadd.f32 %v44_v9, %v38_v7 }
 0x173   :  { %v49_v12 = vadd.f32 %v46_v10, %v37_v5 }
 0x174   :  { %55 = vrot.lane.b32.xlu0 %v50_v11, %s145_s0 }
 0x175   :  { %53 = vrot.lane.b32.xlu1 %v49_v12, %s145_s0 }
 0x178   :  { %63 = vrot.lane.b32.xlu0 %v38_v7, %s146_s21 }
 0x179   :  { %61 = vrot.lane.b32.xlu1 %v37_v5, %s146_s21 }
 0x1e6   :  { %v56_v13 = vpop.permute.xlu0 %55 }
 0x1e7   :  { %v54_v14 = vpop.permute.xlu1 %53 }
 0x1e8   :  { %v58_v15 = vsel %vm57_vm3, %v54_v14, %v56_v13 }
 0x1e9   :  { %v60_v17 = vadd.f32 %v58_v15, %v49_v12 }
 0x1ea   :  { %v64_v16 = vpop.permute.xlu0 %63 }
 0x1eb   :  { %v62_v18 = vpop.permute.xlu1 %61 }
 0x1ec   :  { %v66_v19 = vsel %vm65_vm4, %v62_v18, %v64_v16 }
 0x1ed   :  { %v68_v20 = vadd.f32 %v66_v19, %v60_v17 }
 0x1ef   :  { %v69_v21 = vmul.f32 0.2, %v68_v20 }
 0x1f1   :  { %70 = vst [vmem:[#allocation5] sm:$0x3] %v69_v21 }
 0x1f2   :  { %126 = shalt.err (!%p123_p12)
}
 0x1f3   :  { %s127_s27 = scalar_lea.hbm %s183_s1, 32 }
 0x1f4   :  { %p128_p13 = scmp.ne.s32.totalorder %s183_s1, %s127_s27  ;;  %p131_p0 = scmp.lt.u32.totalorder %s127_s27, %s183_s1 }
 0x1f6   :  { %p133_p1 = pnand %p131_p0, %p128_p13 }
 0x1f8   :  { %136 = shalt.err (!%p133_p1)
}
 0x1f9   :  { %80 = dma.vmem_to_hbm [thread:$0]  %s78_s23, 32, %s183_s1, [#allocation4]  }
 0x1fa   :  { %139 = dma.done.wait [#allocation4], 32  }
 0x1fb   :  { %140 = vsyncadd [#allocation4], 4294967264 }
 0x1fc   :  { %84 = vsyncpa [#allocation3], 1 }
 0x1fd   :  { %85 = vsyncpa [#allocation4], 1 }

</bundles_post_ra>
